<compile_context>
chip_gen: v5e
topology: v5e:2x2
jax: 0.10.0
libtpu: 0.0.40
codegen_flags: <defaults>
</compile_context>

<pallas_src>
import jax
import jax.numpy as jnp
from jax import lax
from jax.experimental import pallas as pl
from jax.experimental.pallas import tpu as pltpu

LN_EPS = 1e-5   # torch.nn.LayerNorm default
LANE = 128      # TPU vreg lane width


def _round_up(v, m):
    return (v + m - 1) // m * m


def _mlp_kernel(n_layer, hidden_dim, compute_dtype):
    """Kernel closure with a statically-unrolled block loop.

    hidden_dim is the TRUE (unpadded) hidden width, used for LayerNorm statistics.
    compute_dtype is the MXU operand dtype (f32 or bf16); accumulation is always f32.
    """
    inv_h = 1.0 / float(hidden_dim)

    def kernel(x_ref, w_in_ref, b_in_ref,
               ln_g_ref, ln_b_ref, w_ff_ref, b_ff_ref,
               w_out_ref, b_out_ref, o_ref):
        # ---- input layer: relu(x @ W_in + b_in) ----
        x = x_ref[...].astype(compute_dtype)
        h = jnp.dot(x, w_in_ref[...].astype(compute_dtype),
                    preferred_element_type=jnp.float32)
        h = jnp.maximum(h + b_in_ref[...], 0.0)
        # dropout: identity in eval mode

        # ---- blocks: h = relu(LayerNorm(h) @ W_ff + b_ff) ----
        # Padded lanes of h are exactly zero (zero-padded weights/biases + relu(0)=0),
        # so sums over the padded width equal sums over the real width; we only need
        # to divide by the true hidden width. LN gamma/beta are zero on padded lanes,
        # which keeps the padding zero for the next layer.
        for layer in range(n_layer):  # static unroll (n_layer is a Python int)
            mean = jnp.sum(h, axis=-1, keepdims=True) * inv_h
            mean_sq = jnp.sum(h * h, axis=-1, keepdims=True) * inv_h
            var = mean_sq - mean * mean
            hn = (h - mean) * lax.rsqrt(var + LN_EPS)          # rsqrt -> EUP slot
            hn = hn * ln_g_ref[layer] + ln_b_ref[layer]
            h = jnp.dot(hn.astype(compute_dtype),
                        w_ff_ref[layer].astype(compute_dtype),
                        preferred_element_type=jnp.float32)
            h = jnp.maximum(h + b_ff_ref[layer], 0.0)
            # dropout: identity in eval mode

        # ---- output layer: h @ W_out + b_out ----
        y = jnp.dot(h.astype(compute_dtype), w_out_ref[...].astype(compute_dtype),
                    preferred_element_type=jnp.float32)
        o_ref[...] = (y + b_out_ref[...]).astype(o_ref.dtype)

    return kernel


def mlp_forward_pallas(x, params, n_layer, hidden_dim, output_dim,
                       block_batch=256, compute_dtype=jnp.float32):
    """Fused MLP forward pass: batch-tiled grid, weights resident in VMEM."""
    B, in_dim = x.shape
    in_pad = params["w_in"].shape[0]
    h_pad = params["w_in"].shape[1]
    out_pad = params["w_out"].shape[1]

    # Batch tile: multiple of 8 sublanes, capped at block_batch.
    tb = min(block_batch, _round_up(B, 8))
    b_pad = _round_up(B, tb)

    # Zero-pad activations to the stored (padded) feature width + padded batch.
    x_p = jnp.zeros((b_pad, in_pad), x.dtype).at[:B, :in_dim].set(x)

    grid = (b_pad // tb,)
    const2 = lambda i: (0, 0)
    const3 = lambda i: (0, 0, 0)

    out = pl.pallas_call(
        _mlp_kernel(n_layer, hidden_dim, compute_dtype),
        out_shape=jax.ShapeDtypeStruct((b_pad, out_pad), jnp.float32),
        grid=grid,
        in_specs=[
            pl.BlockSpec((tb, in_pad), lambda i: (i, 0)),            # x tile (pipelined)
            pl.BlockSpec((in_pad, h_pad), const2),                   # W_in  (resident)
            pl.BlockSpec((1, h_pad), const2),                        # b_in
            pl.BlockSpec((n_layer, 1, h_pad), const3),               # LN gamma (stacked)
            pl.BlockSpec((n_layer, 1, h_pad), const3),               # LN beta
            pl.BlockSpec((n_layer, h_pad, h_pad), const3),           # W_ff (stacked)
            pl.BlockSpec((n_layer, 1, h_pad), const3),               # b_ff
            pl.BlockSpec((h_pad, out_pad), const2),                  # W_out
            pl.BlockSpec((1, out_pad), const2),                      # b_out
        ],
        out_specs=pl.BlockSpec((tb, out_pad), lambda i: (i, 0)),     # lane-dense output
        compiler_params=pltpu.CompilerParams(
            dimension_semantics=("parallel",),                       # megacore on v7x
        ),
        # NOTE(v7x): at these sizes everything fits the 32 MiB scoped VMEM default.
        # If hidden_dim / n_layer grow so that the stacked W_ff block approaches the
        # v7x budget, stream W_ff per layer (add a layer grid axis) or use bf16 weights
        # and set vmem_limit_bytes explicitly.
    )(x_p, params["w_in"], params["b_in"], params["ln_g"], params["ln_b"],
      params["w_ff"], params["b_ff"], params["w_out"], params["b_out"])

    return out[:B, :output_dim]


def init_params(key, input_dim, hidden_dim, output_dim, n_layer):
    """Deterministic synthetic parameters.

    Returns (padded, raw):
      padded: lane-aligned (128-multiple) zero-padded params, stored layout for the kernel.
      raw:    unpadded params for the pure-JAX reference.
    """
    in_pad = _round_up(input_dim, LANE)
    h_pad = _round_up(hidden_dim, LANE)
    out_pad = _round_up(output_dim, LANE)

    ks = jax.random.split(key, 6)
    scale = 0.1
    # weights stored as (in_features, out_features) == torch weight^T
    w_in = scale * jax.random.normal(ks[0], (input_dim, hidden_dim), jnp.float32)
    b_in = scale * jax.random.normal(ks[1], (1, hidden_dim), jnp.float32)
    w_ff = scale * jax.random.normal(ks[2], (n_layer, hidden_dim, hidden_dim), jnp.float32)
    b_ff = scale * jax.random.normal(ks[3], (n_layer, 1, hidden_dim), jnp.float32)
    w_out = scale * jax.random.normal(ks[4], (hidden_dim, output_dim), jnp.float32)
    b_out = scale * jax.random.normal(ks[5], (1, output_dim), jnp.float32)
    ln_g = jnp.ones((n_layer, 1, hidden_dim), jnp.float32)
    ln_b = jnp.zeros((n_layer, 1, hidden_dim), jnp.float32)

    raw = {"w_in": w_in, "b_in": b_in, "ln_g": ln_g, "ln_b": ln_b,
           "w_ff": w_ff, "b_ff": b_ff, "w_out": w_out, "b_out": b_out}

    def pad2(a, r, c):
        return jnp.zeros((r, c), a.dtype).at[:a.shape[0], :a.shape[1]].set(a)

    def pad3(a, n, r, c):
        return jnp.zeros((n, r, c), a.dtype).at[:, :a.shape[1], :a.shape[2]].set(a)

    padded = {
        "w_in": pad2(w_in, in_pad, h_pad),
        "b_in": pad2(b_in, 1, h_pad),
        # IMPORTANT: gamma/beta are ZERO on padded lanes so zero padding propagates.
        "ln_g": pad3(ln_g, n_layer, 1, h_pad),
        "ln_b": pad3(ln_b, n_layer, 1, h_pad),
        "w_ff": pad3(w_ff, n_layer, h_pad, h_pad),
        "b_ff": pad3(b_ff, n_layer, 1, h_pad),
        "w_out": pad2(w_out, h_pad, out_pad),
        "b_out": pad2(b_out, 1, out_pad),
    }
    return padded, raw


def mlp_forward_ref(x, raw, n_layer):
    """Pure-JAX reference (unpadded) for correctness check."""
    h = jnp.maximum(x @ raw["w_in"] + raw["b_in"], 0.0)
    for layer in range(n_layer):
        mean = jnp.mean(h, axis=-1, keepdims=True)
        var = jnp.mean((h - mean) ** 2, axis=-1, keepdims=True)
        hn = (h - mean) / jnp.sqrt(var + LN_EPS)
        hn = hn * raw["ln_g"][layer] + raw["ln_b"][layer]
        h = jnp.maximum(hn @ raw["w_ff"][layer] + raw["b_ff"][layer], 0.0)
    return h @ raw["w_out"] + raw["b_out"]


if __name__ == "__main__":
    # Small shapes consistent with the module's forward.
    batch, input_dim, hidden_dim, output_dim, n_layer = 64, 16, 32, 4, 2

    key = jax.random.PRNGKey(0)
    kx, kp = jax.random.split(key)
    x = jax.random.normal(kx, (batch, input_dim), jnp.float32)
    params, raw = init_params(kp, input_dim, hidden_dim, output_dim, n_layer)

    # block_batch=32 -> grid=(2,): exercises the batch-tiled pipeline path.
    y = mlp_forward_pallas(x, params, n_layer, hidden_dim, output_dim,
                           block_batch=32, compute_dtype=jnp.float32)
    y = jax.block_until_ready(y)

    y_ref = mlp_forward_ref(x, raw, n_layer)
    assert y.shape == (batch, output_dim)
    assert jnp.allclose(y, y_ref, atol=1e-4, rtol=1e-4), "mismatch vs reference"

    print("KERNEL_OK")
</pallas_src>

<mosaic_0001>
module attributes {stable_mosaic.version = 11 : i64} {
  func.func @kernel(%arg0: i32, %arg1: memref<32x128xf32, #tpu.memory_space<vmem>>, %arg2: memref<128x128xf32, #tpu.memory_space<vmem>>, %arg3: memref<1x128xf32, #tpu.memory_space<vmem>>, %arg4: memref<2x1x128xf32, #tpu.memory_space<vmem>>, %arg5: memref<2x1x128xf32, #tpu.memory_space<vmem>>, %arg6: memref<2x128x128xf32, #tpu.memory_space<vmem>>, %arg7: memref<2x1x128xf32, #tpu.memory_space<vmem>>, %arg8: memref<128x128xf32, #tpu.memory_space<vmem>>, %arg9: memref<1x128xf32, #tpu.memory_space<vmem>>, %arg10: memref<32x128xf32, #tpu.memory_space<vmem>>) attributes {dimension_semantics = [#tpu.dimension_semantics<parallel>], iteration_bounds = array<i64: 2>, scalar_prefetch = 0 : i64, scratch_operands = 0 : i64, tpu.core_type = #tpu.core_type<tc>, window_params = [{transform_indices = @transform_0, window_bounds = array<i64: 32, 128>}, {pipeline_mode = #tpu.pipeline_mode<synchronous>, transform_indices = @transform_1, window_bounds = array<i64: 128, 128>}, {pipeline_mode = #tpu.pipeline_mode<synchronous>, transform_indices = @transform_2, window_bounds = array<i64: 1, 128>}, {pipeline_mode = #tpu.pipeline_mode<synchronous>, transform_indices = @transform_3, window_bounds = array<i64: 2, 1, 128>}, {pipeline_mode = #tpu.pipeline_mode<synchronous>, transform_indices = @transform_4, window_bounds = array<i64: 2, 1, 128>}, {pipeline_mode = #tpu.pipeline_mode<synchronous>, transform_indices = @transform_5, window_bounds = array<i64: 2, 128, 128>}, {pipeline_mode = #tpu.pipeline_mode<synchronous>, transform_indices = @transform_6, window_bounds = array<i64: 2, 1, 128>}, {pipeline_mode = #tpu.pipeline_mode<synchronous>, transform_indices = @transform_7, window_bounds = array<i64: 128, 128>}, {pipeline_mode = #tpu.pipeline_mode<synchronous>, transform_indices = @transform_8, window_bounds = array<i64: 1, 128>}, {transform_indices = @transform_9, window_bounds = array<i64: 32, 128>}]} {
    %c0 = arith.constant 0 : index
    %c0_0 = arith.constant 0 : index
    %0 = vector.load %arg1[%c0, %c0_0] : memref<32x128xf32, #tpu.memory_space<vmem>>, vector<32x128xf32>
    %c0_1 = arith.constant 0 : index
    %c0_2 = arith.constant 0 : index
    %1 = vector.load %arg2[%c0_1, %c0_2] : memref<128x128xf32, #tpu.memory_space<vmem>>, vector<128x128xf32>
    %cst = arith.constant dense<0.000000e+00> : vector<32x128xf32>
    %2 = tpu.matmul %0, %1, %cst {dimension_numbers = #tpu.dot_dimension_numbers<[1], [0], [0], [1], [0, 0, 1, 1], [], []>} : vector<32x128xf32>, vector<128x128xf32>, vector<32x128xf32> -> vector<32x128xf32>
    %c0_3 = arith.constant 0 : index
    %c0_4 = arith.constant 0 : index
    %3 = vector.load %arg3[%c0_3, %c0_4] : memref<1x128xf32, #tpu.memory_space<vmem>>, vector<1x128xf32>
    %4 = vector.broadcast %3 : vector<1x128xf32> to vector<32x128xf32>
    %5 = arith.addf %2, %4 : vector<32x128xf32>
    %cst_5 = arith.constant 0.000000e+00 : f32
    %6 = vector.broadcast %cst_5 : f32 to vector<32x128xf32>
    %7 = arith.maximumf %5, %6 : vector<32x128xf32>
    %cst_6 = arith.constant dense<0.000000e+00> : vector<32xf32>
    %8 = vector.multi_reduction <add>, %7, %cst_6 [1] : vector<32x128xf32> to vector<32xf32>
    %9 = vector.shape_cast %8 : vector<32xf32> to vector<32x1xf32>
    %cst_7 = arith.constant 3.125000e-02 : f32
    %10 = vector.broadcast %cst_7 : f32 to vector<32x1xf32>
    %11 = arith.mulf %9, %10 : vector<32x1xf32>
    %12 = arith.mulf %7, %7 : vector<32x128xf32>
    %cst_8 = arith.constant dense<0.000000e+00> : vector<32xf32>
    %13 = vector.multi_reduction <add>, %12, %cst_8 [1] : vector<32x128xf32> to vector<32xf32>
    %14 = vector.shape_cast %13 : vector<32xf32> to vector<32x1xf32>
    %cst_9 = arith.constant 3.125000e-02 : f32
    %15 = vector.broadcast %cst_9 : f32 to vector<32x1xf32>
    %16 = arith.mulf %14, %15 : vector<32x1xf32>
    %17 = arith.mulf %11, %11 : vector<32x1xf32>
    %18 = arith.subf %16, %17 : vector<32x1xf32>
    %19 = vector.broadcast %11 : vector<32x1xf32> to vector<32x128xf32>
    %20 = arith.subf %7, %19 : vector<32x128xf32>
    %cst_10 = arith.constant 9.99999974E-6 : f32
    %21 = vector.broadcast %cst_10 : f32 to vector<32x1xf32>
    %22 = arith.addf %18, %21 : vector<32x1xf32>
    %23 = math.rsqrt %22 : vector<32x1xf32>
    %24 = vector.broadcast %23 : vector<32x1xf32> to vector<32x128xf32>
    %25 = arith.mulf %20, %24 : vector<32x128xf32>
    %c0_11 = arith.constant 0 : index
    %c0_12 = arith.constant 0 : index
    %c0_13 = arith.constant 0 : index
    %26 = vector.load %arg4[%c0_11, %c0_12, %c0_13] : memref<2x1x128xf32, #tpu.memory_space<vmem>>, vector<1x1x128xf32>
    %27 = vector.shape_cast %26 : vector<1x1x128xf32> to vector<1x128xf32>
    %28 = vector.broadcast %27 : vector<1x128xf32> to vector<32x128xf32>
    %29 = arith.mulf %25, %28 : vector<32x128xf32>
    %c0_14 = arith.constant 0 : index
    %c0_15 = arith.constant 0 : index
    %c0_16 = arith.constant 0 : index
    %30 = vector.load %arg5[%c0_14, %c0_15, %c0_16] : memref<2x1x128xf32, #tpu.memory_space<vmem>>, vector<1x1x128xf32>
    %31 = vector.shape_cast %30 : vector<1x1x128xf32> to vector<1x128xf32>
    %32 = vector.broadcast %31 : vector<1x128xf32> to vector<32x128xf32>
    %33 = arith.addf %29, %32 : vector<32x128xf32>
    %c0_17 = arith.constant 0 : index
    %c0_18 = arith.constant 0 : index
    %c0_19 = arith.constant 0 : index
    %34 = vector.load %arg6[%c0_17, %c0_18, %c0_19] : memref<2x128x128xf32, #tpu.memory_space<vmem>>, vector<1x128x128xf32>
    %35 = vector.shape_cast %34 : vector<1x128x128xf32> to vector<128x128xf32>
    %cst_20 = arith.constant dense<0.000000e+00> : vector<32x128xf32>
    %36 = tpu.matmul %33, %35, %cst_20 {dimension_numbers = #tpu.dot_dimension_numbers<[1], [0], [0], [1], [0, 0, 1, 1], [], []>} : vector<32x128xf32>, vector<128x128xf32>, vector<32x128xf32> -> vector<32x128xf32>
    %c0_21 = arith.constant 0 : index
    %c0_22 = arith.constant 0 : index
    %c0_23 = arith.constant 0 : index
    %37 = vector.load %arg7[%c0_21, %c0_22, %c0_23] : memref<2x1x128xf32, #tpu.memory_space<vmem>>, vector<1x1x128xf32>
    %38 = vector.shape_cast %37 : vector<1x1x128xf32> to vector<1x128xf32>
    %39 = vector.broadcast %38 : vector<1x128xf32> to vector<32x128xf32>
    %40 = arith.addf %36, %39 : vector<32x128xf32>
    %cst_24 = arith.constant 0.000000e+00 : f32
    %41 = vector.broadcast %cst_24 : f32 to vector<32x128xf32>
    %42 = arith.maximumf %40, %41 : vector<32x128xf32>
    %cst_25 = arith.constant dense<0.000000e+00> : vector<32xf32>
    %43 = vector.multi_reduction <add>, %42, %cst_25 [1] : vector<32x128xf32> to vector<32xf32>
    %44 = vector.shape_cast %43 : vector<32xf32> to vector<32x1xf32>
    %cst_26 = arith.constant 3.125000e-02 : f32
    %45 = vector.broadcast %cst_26 : f32 to vector<32x1xf32>
    %46 = arith.mulf %44, %45 : vector<32x1xf32>
    %47 = arith.mulf %42, %42 : vector<32x128xf32>
    %cst_27 = arith.constant dense<0.000000e+00> : vector<32xf32>
    %48 = vector.multi_reduction <add>, %47, %cst_27 [1] : vector<32x128xf32> to vector<32xf32>
    %49 = vector.shape_cast %48 : vector<32xf32> to vector<32x1xf32>
    %cst_28 = arith.constant 3.125000e-02 : f32
    %50 = vector.broadcast %cst_28 : f32 to vector<32x1xf32>
    %51 = arith.mulf %49, %50 : vector<32x1xf32>
    %52 = arith.mulf %46, %46 : vector<32x1xf32>
    %53 = arith.subf %51, %52 : vector<32x1xf32>
    %54 = vector.broadcast %46 : vector<32x1xf32> to vector<32x128xf32>
    %55 = arith.subf %42, %54 : vector<32x128xf32>
    %cst_29 = arith.constant 9.99999974E-6 : f32
    %56 = vector.broadcast %cst_29 : f32 to vector<32x1xf32>
    %57 = arith.addf %53, %56 : vector<32x1xf32>
    %58 = math.rsqrt %57 : vector<32x1xf32>
    %59 = vector.broadcast %58 : vector<32x1xf32> to vector<32x128xf32>
    %60 = arith.mulf %55, %59 : vector<32x128xf32>
    %c1 = arith.constant 1 : index
    %c0_30 = arith.constant 0 : index
    %c0_31 = arith.constant 0 : index
    %61 = vector.load %arg4[%c1, %c0_30, %c0_31] : memref<2x1x128xf32, #tpu.memory_space<vmem>>, vector<1x1x128xf32>
    %62 = vector.shape_cast %61 : vector<1x1x128xf32> to vector<1x128xf32>
    %63 = vector.broadcast %62 : vector<1x128xf32> to vector<32x128xf32>
    %64 = arith.mulf %60, %63 : vector<32x128xf32>
    %c1_32 = arith.constant 1 : index
    %c0_33 = arith.constant 0 : index
    %c0_34 = arith.constant 0 : index
    %65 = vector.load %arg5[%c1_32, %c0_33, %c0_34] : memref<2x1x128xf32, #tpu.memory_space<vmem>>, vector<1x1x128xf32>
    %66 = vector.shape_cast %65 : vector<1x1x128xf32> to vector<1x128xf32>
    %67 = vector.broadcast %66 : vector<1x128xf32> to vector<32x128xf32>
    %68 = arith.addf %64, %67 : vector<32x128xf32>
    %c1_35 = arith.constant 1 : index
    %c0_36 = arith.constant 0 : index
    %c0_37 = arith.constant 0 : index
    %69 = vector.load %arg6[%c1_35, %c0_36, %c0_37] : memref<2x128x128xf32, #tpu.memory_space<vmem>>, vector<1x128x128xf32>
    %70 = vector.shape_cast %69 : vector<1x128x128xf32> to vector<128x128xf32>
    %cst_38 = arith.constant dense<0.000000e+00> : vector<32x128xf32>
    %71 = tpu.matmul %68, %70, %cst_38 {dimension_numbers = #tpu.dot_dimension_numbers<[1], [0], [0], [1], [0, 0, 1, 1], [], []>} : vector<32x128xf32>, vector<128x128xf32>, vector<32x128xf32> -> vector<32x128xf32>
    %c1_39 = arith.constant 1 : index
    %c0_40 = arith.constant 0 : index
    %c0_41 = arith.constant 0 : index
    %72 = vector.load %arg7[%c1_39, %c0_40, %c0_41] : memref<2x1x128xf32, #tpu.memory_space<vmem>>, vector<1x1x128xf32>
    %73 = vector.shape_cast %72 : vector<1x1x128xf32> to vector<1x128xf32>
    %74 = vector.broadcast %73 : vector<1x128xf32> to vector<32x128xf32>
    %75 = arith.addf %71, %74 : vector<32x128xf32>
    %cst_42 = arith.constant 0.000000e+00 : f32
    %76 = vector.broadcast %cst_42 : f32 to vector<32x128xf32>
    %77 = arith.maximumf %75, %76 : vector<32x128xf32>
    %c0_43 = arith.constant 0 : index
    %c0_44 = arith.constant 0 : index
    %78 = vector.load %arg8[%c0_43, %c0_44] : memref<128x128xf32, #tpu.memory_space<vmem>>, vector<128x128xf32>
    %cst_45 = arith.constant dense<0.000000e+00> : vector<32x128xf32>
    %79 = tpu.matmul %77, %78, %cst_45 {dimension_numbers = #tpu.dot_dimension_numbers<[1], [0], [0], [1], [0, 0, 1, 1], [], []>} : vector<32x128xf32>, vector<128x128xf32>, vector<32x128xf32> -> vector<32x128xf32>
    %c0_46 = arith.constant 0 : index
    %c0_47 = arith.constant 0 : index
    %80 = vector.load %arg9[%c0_46, %c0_47] : memref<1x128xf32, #tpu.memory_space<vmem>>, vector<1x128xf32>
    %81 = vector.broadcast %80 : vector<1x128xf32> to vector<32x128xf32>
    %82 = arith.addf %79, %81 : vector<32x128xf32>
    %c0_48 = arith.constant 0 : index
    %c0_49 = arith.constant 0 : index
    %83 = vector.load %arg10[%c0_48, %c0_49] : memref<32x128xf32, #tpu.memory_space<vmem>>, vector<32x128xf32>
    tpu.vector_store %arg10[%c0_48, %c0_49], %82 {strides = array<i32>} : memref<32x128xf32, #tpu.memory_space<vmem>>, vector<32x128xf32>,
    return
  }
  func.func @transform_0(%arg0: i32) -> (i32, i32) {
    %c0_i32 = arith.constant 0 : i32
    %c0_i32_0 = arith.constant 0 : i32
    return %arg0, %c0_i32 : i32, i32
  }
  func.func @transform_1(%arg0: i32) -> (i32, i32) {
    %c0_i32 = arith.constant 0 : i32
    %c0_i32_0 = arith.constant 0 : i32
    %c0_i32_1 = arith.constant 0 : i32
    return %c0_i32, %c0_i32_0 : i32, i32
  }
  func.func @transform_2(%arg0: i32) -> (i32, i32) {
    %c0_i32 = arith.constant 0 : i32
    %c0_i32_0 = arith.constant 0 : i32
    %c0_i32_1 = arith.constant 0 : i32
    return %c0_i32, %c0_i32_0 : i32, i32
  }
  func.func @transform_3(%arg0: i32) -> (i32, i32, i32) {
    %c0_i32 = arith.constant 0 : i32
    %c0_i32_0 = arith.constant 0 : i32
    %c0_i32_1 = arith.constant 0 : i32
    %c0_i32_2 = arith.constant 0 : i32
    return %c0_i32, %c0_i32_0, %c0_i32_1 : i32, i32, i32
  }
  func.func @transform_4(%arg0: i32) -> (i32, i32, i32) {
    %c0_i32 = arith.constant 0 : i32
    %c0_i32_0 = arith.constant 0 : i32
    %c0_i32_1 = arith.constant 0 : i32
    %c0_i32_2 = arith.constant 0 : i32
    return %c0_i32, %c0_i32_0, %c0_i32_1 : i32, i32, i32
  }
  func.func @transform_5(%arg0: i32) -> (i32, i32, i32) {
    %c0_i32 = arith.constant 0 : i32
    %c0_i32_0 = arith.constant 0 : i32
    %c0_i32_1 = arith.constant 0 : i32
    %c0_i32_2 = arith.constant 0 : i32
    return %c0_i32, %c0_i32_0, %c0_i32_1 : i32, i32, i32
  }
  func.func @transform_6(%arg0: i32) -> (i32, i32, i32) {
    %c0_i32 = arith.constant 0 : i32
    %c0_i32_0 = arith.constant 0 : i32
    %c0_i32_1 = arith.constant 0 : i32
    %c0_i32_2 = arith.constant 0 : i32
    return %c0_i32, %c0_i32_0, %c0_i32_1 : i32, i32, i32
  }
  func.func @transform_7(%arg0: i32) -> (i32, i32) {
    %c0_i32 = arith.constant 0 : i32
    %c0_i32_0 = arith.constant 0 : i32
    %c0_i32_1 = arith.constant 0 : i32
    return %c0_i32, %c0_i32_0 : i32, i32
  }
  func.func @transform_8(%arg0: i32) -> (i32, i32) {
    %c0_i32 = arith.constant 0 : i32
    %c0_i32_0 = arith.constant 0 : i32
    %c0_i32_1 = arith.constant 0 : i32
    return %c0_i32, %c0_i32_0 : i32, i32
  }
  func.func @transform_9(%arg0: i32) -> (i32, i32) {
    %c0_i32 = arith.constant 0 : i32
    %c0_i32_0 = arith.constant 0 : i32
    return %arg0, %c0_i32 : i32, i32
  }
}

</mosaic_0001>

<bundles_post_ra>
// kernel: tpu_custom_call.1
= control target key start
LH: loop header
LB: loop body
LE: loop exit
PB: predicated region body
PF: predicated region fallthrough
CT: control target
= control target key end

     0   :  { %s1769_s0 = inlined_call_operand.hbm [shape: f32[64,128], index: 0, kind: input, shape index: {}]   ;;  %s1770_s1 = inlined_call_operand.hbm [shape: f32[128,128], index: 1, kind: input, shape index: {}]   ;;  %s1771_s2 = inlined_call_operand.hbm [shape: f32[1,128], index: 2, kind: input, shape index: {}]   ;;  %s1772_s3 = inlined_call_operand.vmem [shape: f32[2,1,128], index: 3, kind: input, shape index: {}]   ;;  %s1773_s4 = inlined_call_operand.hbm [shape: f32[2,1,128], index: 4, kind: input, shape index: {}]   ;;  %s1774_s5 = inlined_call_operand.hbm [shape: f32[2,128,128], index: 5, kind: input, shape index: {}]   ;;  %s1775_s6 = inlined_call_operand.vmem [shape: f32[2,1,128], index: 6, kind: input, shape index: {}]   ;;  %s1776_s7 = inlined_call_operand.hbm [shape: f32[128,128], index: 7, kind: input, shape index: {}]   ;;  %s1777_s8 = inlined_call_operand.vmem [shape: f32[1,128], index: 8, kind: input, shape index: {}]   ;;  %s1778_s9 = inlined_call_operand.hbm [shape: f32[64,128], index: 9, kind: output, shape index: {}]  }
   0x1   :  { %1781 = sst [smem:[#allocation19_spill]] %s1770_s1 }
   0x2   :  { %1782 = sst [smem:[#allocation20_spill]] %s1771_s2 }
   0x3   :  { %1783 = sst [smem:[#allocation21_spill]] %s1773_s4 }
   0x4   :  { %14 = vsyncpa [#allocation3], 0 }
   0x5   :  { %16 = vsyncpa [#allocation3 + $0x1], 0 }
   0x6   :  { %17 = vsyncpa [#allocation6], 0 }
   0x7   :  { %18 = vsyncpa [#allocation9], 0 }
   0x8   :  { %19 = vsyncpa [#allocation12], 0 }
   0x9   :  { %20 = vsyncpa [#allocation4], 0 }
   0xa   :  { %22 = vsyncpa [#allocation4 + $0x1], 0  ;;  %s1477_s30 = smov 0   ;;  %s1479_s10 = smov 0  }
   0xb   :  { %s1481_s11 = smov 0   ;;  %s1483_s12 = smov 0  }
   0xc LB: > { %s1784_s1 = sld [smem:[#allocation19_spill]]  ;;  %s1501_s16 = sadd.s32 4294967295, %s1414_s12   ;;  %s1414_s12 = sphi %s1483_s12, %s1799_s12   ;;  %s1410_s11 = sphi %s1481_s11, %s1798_s11   ;;  %s1406_s10 = sphi %s1479_s10, %s1797_s10   ;;  %s1402_s30 = sphi %s1477_s30, %s1796_s30  }
   0xd   : > { %p1002_p0 = scmp.ge.s32.totalorder %s1414_s12, 1  ;;  %p49_p1 = scmp.eq.s32.totalorder %s1501_s16, 0 }
   0xe   : > { %p253_p2 = scmp.lt.s32.totalorder %s1414_s12, 3  ;;  %s1416_s18 = smov [#allocation5]  }
   0xf   : > { %s266_s19 = sshll.u32 %s1416_s18, 4  ;;  %s1786_s4 = sld [smem:[#allocation21_spill]]  ;;  %s267_s19 = int_to_ptr.vmem [resolvable:$true] %s266_s19 }
  0x10   : > { %p1506_p3 = pnand %p1002_p0, %p253_p2  ;;  %s1417_s24 = smov [#allocation8]  }
  0x11   : > { %s295_s25 = sshll.u32 %s1417_s24, 4  ;;  %s1779_s26 = smov 128   ;;  %s296_s25 = int_to_ptr.vmem [resolvable:$true] %s295_s25 }
  0x12   : > { %s264_s15 = sshll.u32 %s1784_s1, 4  ;;  %p1053_p4 = pneg %p1506_p3  ;;  %s265_s15 = int_to_ptr.hbm [resolvable:$true] %s264_s15 }
  0x13   : > { %s1780_s27 = smov 8   ;;  %s1420_s28 = smov 16  }
  0x14   : > { %p1518_p6 = pnand %p1053_p4, %p49_p1  ;;  %s1421_s29 = smov 1  }
  0x15   : > { %s293_s22 = sshll.u32 %s1786_s4, 4  ;;  %s1788_s2 = sld [smem:[#allocation20_spill]]  ;;  %s294_s22 = int_to_ptr.hbm [resolvable:$true] %s293_s22 }
  0x16   : > { %1056 = dma.hbm_to_vmem [thread:$0]  (!%p1518_p6), %s265_s15, 2048, %s267_s19, [#allocation6], %s1779_s26, %s1779_s26, %s1780_s27  }
  0x17   : > { %1062 = dma.hbm_to_vmem [thread:$0]  (!%p1518_p6), %s294_s22, 32, %s296_s25, [#allocation9], %s1420_s28, %s1420_s28, %s1421_s29  }
  0x18   : > { %s1422_s20 = smov [#allocation7]   ;;  %s307_s15 = sshll.u32 %s1774_s5, 4  ;;  %s308_s15 = int_to_ptr.hbm [resolvable:$true] %s307_s15 }
  0x19   : > { %s281_s21 = sshll.u32 %s1422_s20, 4  ;;  %s1423_s19 = smov [#allocation10]   ;;  %s282_s21 = int_to_ptr.vmem [resolvable:$true] %s281_s21 }
  0x1a   : > { %s309_s22 = sshll.u32 %s1423_s19, 4  ;;  %s324_s29 = sshll.u32 %s1776_s7, 4  ;;  %s310_s22 = int_to_ptr.vmem [resolvable:$true] %s309_s22  ;;  %s325_s29 = int_to_ptr.hbm [resolvable:$true] %s324_s29 }
  0x1b   : > { %s279_s18 = sshll.u32 %s1788_s2, 4  ;;  %s1424_s1 = smov [#allocation11]   ;;  %s280_s18 = int_to_ptr.hbm [resolvable:$true] %s279_s18 }
  0x1c   : > { %1059 = dma.hbm_to_vmem [thread:$0]  (!%p1518_p6), %s280_s18, 16, %s282_s21, [#allocation6]  }
  0x1d   : > { %1065 = dma.hbm_to_vmem [thread:$0]  (!%p1518_p6), %s308_s15, 4096, %s310_s22, [#allocation9], %s1779_s26, %s1779_s26, %s1780_s27  }
  0x1e   : > { %s326_s13 = sshll.u32 %s1424_s1, 4  ;;  %s1001_s14 = sadd.s32 4294967294, %s1414_s12   ;;  %s327_s13 = int_to_ptr.vmem [resolvable:$true] %s326_s13 }
  0x1f   : > { %1068 = dma.hbm_to_vmem [thread:$0]  (!%p1518_p6), %s325_s29, 2048, %s327_s13, [#allocation12], %s1779_s26, %s1779_s26, %s1780_s27  }
  0x20   : > { %s1552_s18 = sadd.s32 1, %s1414_s12   ;;  %s35_s20 = sadd.s32 1, %s1410_s11 }
  0x21   : > { %s32_s21 = ssub.s32 %s1414_s12, %s1552_s18  ;;  %p42_p7 = scmp.ne.s32.totalorder %s1410_s11, %s1406_s10 }
  0x22   : > { %p33_p8 = scmp.eq.s32.totalorder %s32_s21, 0  ;;  %p43_p9 = scmp.eq.s32.totalorder %s1414_s12, 0 }
  0x23   : > { %p48_p10 = scmp.ne.s32.totalorder %s1406_s10, %s1402_s30  ;;  %p240_p11 = scmp.eq.s32.totalorder %s1501_s16, 1 }
  0x24   : > { %s1564_s24 = scalar_select %p33_p8, %s1410_s11, %s35_s20  }
  0x25   : > { %p1568_p12 = por %p49_p1, %p48_p10  ;;  %p1572_p13 = por %p240_p11, %p42_p7 }
  0x26   : > { %p246_p0 = scmp.eq.s32.totalorder %s1001_s14, 1  ;;  %p44_p2 = por %p43_p9, %p42_p7 }
  0x27   : > { %s343_s19 = sand.u32 1, %s1410_s11   ;;  %p1082_p6 = scmp.lt.s32.totalorder %s1414_s12, 2 }
  0x28   : > { %p1577_p4 = por %p246_p0, %p48_p10  ;;  %s1009_s25 = sshll.u32 %s343_s19, 5 }
  0x29   : > { %s1027_s28 = sshll.u32 %s1414_s12, 5  ;;  %s347_s21 = scalar_lea.vmem [#allocation2], %s1009_s25 }
  0x2a   : > { %s352_s13 = scalar_lea.hbm %s1769_s0, %s1027_s28  ;;  %s355_s26 = sshll.u32 %s347_s21, 4  ;;  %s356_s26 = int_to_ptr.vmem [resolvable:$true] %s355_s26 }
  0x2b   : > { %s353_s20 = sshll.u32 %s352_s13, 4  ;;  %p1586_p8 = pnand %p1082_p6, %p44_p2  ;;  %s354_s20 = int_to_ptr.hbm [resolvable:$true] %s353_s20 }
  0x2c   : > { %s344_s27 = scalar_lea.sflag [#allocation3], %s343_s19  ;;  %s1306_s2 = sshra.s32 %s354_s20, 4  ;;  %s1307_s2 = int_to_ptr.hbm [resolvable:$true] %s1306_s2 }
  0x2d   : > { %s1308_s4 = scalar_lea.hbm %s1307_s2, 32  ;;  %p1310_p9 = pneg %p1586_p8 }
  0x2e   : > { %p1309_p7 = scmp.ne.s32.totalorder %s1307_s2, %s1308_s4  ;;  %s1313_s25 = scalar_lea.hbm %s1769_s0, 64 }
  0x2f   : > { %p1314_p0 = scmp.lt.s32.totalorder %s1307_s2, %s1769_s0  ;;  %p1315_p2 = scmp.lt.s32.totalorder %s1313_s25, %s1308_s4 }
  0x30   : > { %p1311_p10 = pnand %p1310_p9, %p1309_p7 }
  0x31   : > { %p1316_p6 = por %p1315_p2, %p1314_p0 }
  0x32   : > { %p1312_p11 = pneg %p1311_p10 }
  0x34   : > { %p1317_p5 = pnand %p1316_p6, %p1312_p11 }
  0x36   : > { %1320 = shalt.err (!%p1317_p5)
}
  0x37   : > { %s1793_s19 = smov 8   ;;  %s1794_s21 = smov 128  }
  0x38   : > { %1072 = dma.hbm_to_vmem [thread:$0]  (!%p1586_p8), %s354_s20, 512, %s356_s26, %s344_s27, %s1794_s21, %s1794_s21, %s1793_s19  }
  0x39   : > { %367 = sbr.rel (%p1506_p3) target bundleno = 961 (0x3c1), region = 56  ;;  %s1606_s28 = sand.u32 (!%p1506_p3), 1, %s1406_s10  }
  0x3a   : > { %s1013_s2 = sshll.u32 (!%p1506_p3), %s1606_s28, 5  ;;  %s370_s4 = scalar_lea.sflag (!%p1506_p3), [#allocation3], %s1606_s28 }
  0x3b   : > { %s1612_s29 = scalar_lea.vmem (!%p1506_p3), [#allocation2], %s1013_s2 }
  0x3e   : > { %1381 = dma.done.wait (%p1568_p12), %s370_s4, 512  }
  0x3f   : > { %1383 = vsyncadd (%p1568_p12), %s370_s4, 4294966784 }
  0x40   : > { %1385 = dma.done.wait (%p49_p1), [#allocation6], 2064  }
  0x41   : > { %1387 = vsyncadd (%p49_p1), [#allocation6], 4294965232 }
  0x42   : > { %1389 = dma.done.wait (%p49_p1), [#allocation9], 4128  }
  0x43   : > { %1391 = vsyncadd (%p49_p1), [#allocation9], 4294963168 }
  0x44   : > { %1393 = dma.done.wait (%p49_p1), [#allocation12], 2048  }
  0x45   : > { %1395 = vsyncadd (%p49_p1), [#allocation12], 4294965248  ;;  %v455_v0 = vld [vmem:[#allocation5 + $0x78] sm:$0xff]  ;;  %v454_v1 = vld [vmem:[#allocation5 + $0x70] sm:$0xff]  ;;  %s433_s21 = scalar_lea.vmem [#allocation13], %s1013_s2  ;;  %s1028_s4 = sshll.u32 %s1501_s16, 5 }
  0x46   : > { %460 = vmatpush.msra.mxu0 %v455_v0  ;;  %v453_v2 = vld [vmem:[#allocation5 + $0x68] sm:$0xff]  ;;  %v452_v3 = vld [vmem:[#allocation5 + $0x60] sm:$0xff]  ;;  %v451_v4 = vld [vmem:[#allocation5 + $0x58] sm:$0xff]  ;;  %s876_s26 = scalar_lea.hbm %s1778_s9, %s1028_s4  ;;  %s877_s27 = sshll.u32 %s433_s21, 4  ;;  %s878_s27 = int_to_ptr.vmem [resolvable:$true] %s877_s27 }
  0x47   : > { %v450_v5 = vld [vmem:[#allocation5 + $0x50] sm:$0xff]  ;;  %v449_v6 = vld [vmem:[#allocation5 + $0x48] sm:$0xff]  ;;  %v448_v7 = vld [vmem:[#allocation5 + $0x40] sm:$0xff]  ;;  %s879_s23 = sshll.u32 %s876_s26, 4  ;;  %s865_s2 = scalar_lea.sflag [#allocation4], %s1606_s28  ;;  %s880_s23 = int_to_ptr.hbm [resolvable:$true] %s879_s23 }
  0x48   : > { %461 = vmatpush.msra.mxu0 %v454_v1  ;;  %v447_v8 = vld [vmem:[#allocation5 + $0x38] sm:$0xff]  ;;  %v446_v9 = vld [vmem:[#allocation5 + $0x30] sm:$0xff]  ;;  %v445_v10 = vld [vmem:[#allocation5 + $0x28] sm:$0xff]  ;;  %s1350_s20 = sshra.s32 %s880_s23, 4  ;;  %s1356_s1 = scalar_lea.hbm %s1778_s9, 64  ;;  %s1351_s20 = int_to_ptr.hbm [resolvable:$true] %s1350_s20 }
  0x49   : > { %v444_v11 = vld [vmem:[#allocation5 + $0x20] sm:$0xff]  ;;  %v443_v12 = vld [vmem:[#allocation5 + $0x18] sm:$0xff]  ;;  %v442_v13 = vld [vmem:[#allocation5 + $0x10] sm:$0xff]  ;;  %s1352_s14 = scalar_lea.hbm %s1351_s20, 32  ;;  %p1357_p12 = scmp.lt.s32.totalorder %s1351_s20, %s1778_s9 }
  0x4a   : > { %462 = vmatpush.msra.mxu0 %v453_v2  ;;  %v441_v14 = vld [vmem:[#allocation5 + $0x8] sm:$0xff]  ;;  %v440_v15 = vld [vmem:[#allocation5] sm:$0xff]  ;;  %v438_v18 = vld [vmem:[%s1612_s29 + $0x10] sm:$0xff]  ;;  %p1353_p1 = scmp.ne.s32.totalorder %s1351_s20, %s1352_s14  ;;  %p1358_p8 = scmp.lt.s32.totalorder %s1356_s1, %s1352_s14 }
  0x4b   : > { %v436_v16 = vld [vmem:[%s1612_s29] sm:$0xff]  ;;  %v437_v17 = vld [vmem:[%s1612_s29 + $0x8] sm:$0xff]  ;;  %v439_v19 = vld [vmem:[%s1612_s29 + $0x18] sm:$0xff] }
  0x4c   : > { %463 = vmatpush.msra.mxu0 %v452_v3  ;;  %v1132_v20 = vld [vmem:[#allocation7] ss:$0 sm:$0xff]  ;;  %v611_v38 = vld [vmem:[#allocation10 + $0x70] sm:$0xff]  ;;  %v610_v39 = vld [vmem:[#allocation10 + $0x68] sm:$0xff]  ;;  %p1354_p3 = pnand %p1353_p1, %p1572_p13  ;;  %p1359_p7 = por %p1358_p8, %p1357_p12 }
  0x4d   : > { %v612_v37 = vld [vmem:[#allocation10 + $0x78] sm:$0xff]  ;;  %v609_v40 = vld [vmem:[#allocation10 + $0x60] sm:$0xff]  ;;  %v607_v42 = vld [vmem:[#allocation10 + $0x50] sm:$0xff] }
  0x4e   : > { %464 = vmatpush.msra.mxu0 %v451_v4  ;;  %617 = vmatpush.msra.mxu1 %v612_v37  ;;  %v608_v41 = vld [vmem:[#allocation10 + $0x58] sm:$0xff]  ;;  %v606_v43 = vld [vmem:[#allocation10 + $0x48] sm:$0xff]  ;;  %v605_v44 = vld [vmem:[#allocation10 + $0x40] sm:$0xff]  ;;  %p1355_p5 = pneg %p1354_p3 }
  0x4f   : > { %v604_v45 = vld [vmem:[#allocation10 + $0x38] sm:$0xff]  ;;  %v603_v46 = vld [vmem:[#allocation10 + $0x30] sm:$0xff]  ;;  %v602_v47 = vld [vmem:[#allocation10 + $0x28] sm:$0xff] }
  0x50   : > { %465 = vmatpush.msra.mxu0 %v450_v5  ;;  %618 = vmatpush.msra.mxu1 %v611_v38  ;;  %v601_v48 = vld [vmem:[#allocation10 + $0x20] sm:$0xff]  ;;  %v600_v49 = vld [vmem:[#allocation10 + $0x18] sm:$0xff]  ;;  %v599_v51 = vld [vmem:[#allocation10 + $0x10] sm:$0xff]  ;;  %p1360_p9 = pnand %p1359_p7, %p1355_p5 }
  0x51   : > { %v598_v52 = vld [vmem:[#allocation10 + $0x8] sm:$0xff]  ;;  %v597_v54 = vld [vmem:[#allocation10] sm:$0xff] }
  0x52   : > { %466 = vmatpush.msra.mxu0 %v449_v6  ;;  %619 = vmatpush.msra.mxu1 %v610_v39 }
  0x54   : > { %467 = vmatpush.msra.mxu0 %v448_v7  ;;  %620 = vmatpush.msra.mxu1 %v609_v40 }
  0x56   : > { %468 = vmatpush.msra.mxu0 %v447_v8  ;;  %621 = vmatpush.msra.mxu1 %v608_v41 }
  0x58   : > { %469 = vmatpush.msra.mxu0 %v446_v9  ;;  %622 = vmatpush.msra.mxu1 %v607_v42 }
  0x5a   : > { %470 = vmatpush.msra.mxu0 %v445_v10  ;;  %623 = vmatpush.msra.mxu1 %v606_v43 }
  0x5c   : > { %471 = vmatpush.msra.mxu0 %v444_v11  ;;  %624 = vmatpush.msra.mxu1 %v605_v44 }
  0x5e   : > { %472 = vmatpush.msra.mxu0 %v443_v12  ;;  %625 = vmatpush.msra.mxu1 %v604_v45 }
  0x60   : > { %473 = vmatpush.msra.mxu0 %v442_v13  ;;  %626 = vmatpush.msra.mxu1 %v603_v46 }
  0x62   : > { %474 = vmatpush.msra.mxu0 %v441_v14  ;;  %627 = vmatpush.msra.mxu1 %v602_v47 }
  0x64   : > { %475 = vmatpush.msra.mxu0 %v440_v15  ;;  %628 = vmatpush.msra.mxu1 %v601_v48 }
  0x65   : > { %476 = vmatmul.f32.vlgmr.msra.gmra.mxu0 %v436_v16 }
  0x66   : > { %629 = vmatpush.msra.mxu1 %v600_v49 }
  0x68   : > { %630 = vmatpush.msra.mxu1 %v599_v51 }
  0x6a   : > { %631 = vmatpush.msra.mxu1 %v598_v52 }
  0x6c   : > { %632 = vmatpush.msra.mxu1 %v597_v54 }
  0x6d   : > { %479 = vmatmul.f32.gmra.mxu0 %v437_v17 }
  0x75   : > { %482 = vmatmul.f32.gmra.mxu0 %v438_v18 }
  0x7d   : > { %485 = vmatmul.f32.gmra.mxu0 %v439_v19 }
  0xe2   : > { %v477_v21 = vpop.f32.mrf.mxu0 }
  0xe3   : > { %v478_v22 = vadd.f32 %v1132_v20, %v477_v21 }
  0xe5   : > { %v1634_v23 = vmax.f32 %v478_v22, 0.0 }
  0xe7   : > { %493 = vadd.xlane.f32.xlu0 %v1634_v23  ;;  %v505_v27 = vmul.f32 %v1634_v23, %v1634_v23 }
  0xea   : > { %v480_v24 = vpop.f32.mrf.mxu0 }
  0xeb   : > { %v481_v25 = vadd.f32 %v1132_v20, %v480_v24 }
  0xed   : > { %v1637_v26 = vmax.f32 %v481_v25, 0.0 }
  0xef   : > { %495 = vadd.xlane.f32.xlu1 %v1637_v26  ;;  %509 = vadd.xlane.f32.xlu0 %v505_v27  ;;  %v506_v31 = vmul.f32 %v1637_v26, %v1637_v26 }
  0xf2   : > { %v483_v28 = vpop.f32.mrf.mxu0 }
  0xf3   : > { %v484_v29 = vadd.f32 %v1132_v20, %v483_v28  ;;  %v1133_v28 = vld [vmem:[%s1772_s3] ss:$0 sm:$0xff] }
  0xf5   : > { %v1642_v30 = vmax.f32 %v484_v29, 0.0 }
  0xf7   : > { %497 = vadd.xlane.f32.xlu2 %v1642_v30  ;;  %511 = vadd.xlane.f32.xlu1 %v506_v31  ;;  %v507_v35 = vmul.f32 %v1642_v30, %v1642_v30 }
  0xfa   : > { %v486_v32 = vpop.f32.mrf.mxu0 }
  0xfb   : > { %v487_v33 = vadd.f32 %v1132_v20, %v486_v32 }
  0xfd   : > { %v1647_v34 = vmax.f32 %v487_v33, 0.0  ;;  %v1134_v33 = vld [vmem:[#allocation8] ss:$0 sm:$0xff] }
  0xff   : > { %513 = vadd.xlane.f32.xlu2 %v507_v35  ;;  %499 = vadd.xlane.f32.xlu0 %v1647_v34  ;;  %v508_v36 = vmul.f32 %v1647_v34, %v1647_v34 }
 0x101   : > { %515 = vadd.xlane.f32.xlu1 %v508_v36 }
 0x15a   : > { %v494_v50 = vpop.xlane.xlu0 %493 }
 0x15b   : > { %v501_v53 = vmul.f32 0.03125, %v494_v50 }
 0x15d   : > { %v521_v57 = vmul.f32 %v501_v53, %v501_v53  ;;  %v529_v25 = vsub.f32 %v1634_v23, %v501_v53 }
 0x162   : > { %v496_v55 = vpop.xlane.xlu1 %495  ;;  %v510_v56 = vpop.xlane.xlu0 %509 }
 0x163   : > { %v517_v58 = vmul.f32 0.03125, %v510_v56  ;;  %v502_v60 = vmul.f32 0.03125, %v496_v55 }
 0x165   : > { %v525_v59 = vsub.f32 %v517_v58, %v521_v57  ;;  %v522_v0 = vmul.f32 %v502_v60, %v502_v60  ;;  %v530_v42 = vsub.f32 %v1637_v26, %v502_v60 }
 0x167   : > { %v533_v61 = vadd.f32 1e-05, %v525_v59 }
 0x169   : > { %1140 = vrsqrt.f32 %v533_v61  ;;  %vm543_vm1 = vweird.f32 %v533_v61 }
 0x16a   : > { %v498_v62 = vpop.xlane.xlu2 %497  ;;  %v512_v63 = vpop.xlane.xlu1 %511 }
 0x16b   : > { %v518_v1 = vmul.f32 0.03125, %v512_v63  ;;  %v1654_v4 = vmul.f32 0.03125, %v498_v62 }
 0x16d   : > { %v526_v2 = vsub.f32 %v518_v1, %v522_v0  ;;  %v523_v10 = vmul.f32 %v1654_v4, %v1654_v4  ;;  %v531_v26 = vsub.f32 %v1642_v30, %v1654_v4  ;;  %v1135_v30 = vld [vmem:[%s1775_s6] ss:$0 sm:$0xff] }
 0x16f   : > { %v1141_v3 = vpop.eup %1140  ;;  %v534_v5 = vadd.f32 1e-05, %v526_v2 }
 0x170   : > { %v538_v6 = vmul.f32 %v1141_v3, %v533_v61  ;;  %vm544_vm0 = vweird.f32 %v1141_v3 }
 0x171   : > { %1142 = vrsqrt.f32 %v534_v5  ;;  %vm545_vm2 = vmor %vm543_vm1, %vm544_vm0  ;;  %vm553_vm4 = vweird.f32 %v534_v5 }
 0x172   : > { %v539_v7 = vmul.f32 %v1141_v3, %v538_v6  ;;  %v514_v8 = vpop.xlane.xlu2 %513  ;;  %v500_v9 = vpop.xlane.xlu0 %499 }
 0x173   : > { %v519_v11 = vmul.f32 0.03125, %v514_v8  ;;  %v1658_v12 = vmul.f32 0.03125, %v500_v9 }
 0x174   : > { %v540_v13 = vmul.f32 0.5, %v539_v7  ;;  %v516_v14 = vpop.xlane.xlu1 %515 }
 0x175   : > { %v527_v15 = vsub.f32 %v519_v11, %v523_v10  ;;  %v524_v16 = vmul.f32 %v1658_v12, %v1658_v12  ;;  %v520_v17 = vmul.f32 0.03125, %v516_v14  ;;  %v532_v59 = vsub.f32 %v1647_v34, %v1658_v12 }
 0x176   : > { %v541_v18 = vsub.f32 1.5, %v540_v13 }
 0x177   : > { %v1143_v19 = vpop.eup %1142  ;;  %v535_v20 = vadd.f32 1e-05, %v527_v15  ;;  %v528_v21 = vsub.f32 %v520_v17, %v524_v16  ;;  %v772_v16 = vld [vmem:[#allocation10 + $0xf8] sm:$0xff]  ;;  %v771_v17 = vld [vmem:[#allocation10 + $0xf0] sm:$0xff] }
 0x178   : > { %v548_v22 = vmul.f32 %v1143_v19, %v534_v5  ;;  %v542_v24 = vmul.f32 %v1141_v3, %v541_v18  ;;  %vm554_vm3 = vweird.f32 %v1143_v19  ;;  %778 = vmatpush.msra.mxu2 %v772_v16  ;;  %v770_v18 = vld [vmem:[#allocation10 + $0xe8] sm:$0xff] }
 0x179   : > { %1144 = vrsqrt.f32 %v535_v20  ;;  %v536_v27 = vadd.f32 1e-05, %v528_v21  ;;  %vm555_vm5 = vmor %vm553_vm4, %vm554_vm3  ;;  %vm563_vm7 = vweird.f32 %v535_v20  ;;  %v767_v21 = vld [vmem:[#allocation10 + $0xd0] sm:$0xff] }
 0x17a   : > { %v549_v29 = vmul.f32 %v1143_v19, %v548_v22  ;;  %v546_v31 = vsel %vm545_vm2, %v1141_v3, %v542_v24  ;;  %779 = vmatpush.msra.mxu2 %v771_v17  ;;  %v766_v22 = vld [vmem:[#allocation10 + $0xc8] sm:$0xff]  ;;  %v765_v24 = vld [vmem:[#allocation10 + $0xc0] sm:$0xff] }
 0x17b   : > { %1146 = vrsqrt.f32 %v536_v27  ;;  %v577_v32 = vmul.f32 %v546_v31, %v529_v25  ;;  %vm573_vm8 = vweird.f32 %v536_v27  ;;  %v764_v25 = vld [vmem:[#allocation10 + $0xb8] sm:$0xff]  ;;  %v823_v17 = vld [vmem:[#allocation11 + $0x60] sm:$0xff] }
 0x17c   : > { %v550_v35 = vmul.f32 0.5, %v549_v29  ;;  %780 = vmatpush.msra.mxu2 %v770_v18  ;;  %v761_v29 = vld [vmem:[#allocation10 + $0xa0] sm:$0xff]  ;;  %v760_v31 = vld [vmem:[#allocation10 + $0x98] sm:$0xff] }
 0x17d   : > { %v585_v36 = vmul.f32 %v1133_v28, %v577_v32  ;;  %v759_v32 = vld [vmem:[#allocation10 + $0x90] sm:$0xff] }
 0x17e   : > { %v551_v37 = vsub.f32 1.5, %v550_v35  ;;  %v757_v35 = vld [vmem:[#allocation10 + $0x80] sm:$0xff] }
 0x17f   : > { %v1145_v38 = vpop.eup %1144  ;;  %v593_v39 = vadd.f32 %v1134_v33, %v585_v36 }
 0x180   : > { %v558_v23 = vmul.f32 %v1145_v38, %v535_v20  ;;  %v552_v40 = vmul.f32 %v1143_v19, %v551_v37  ;;  %vm564_vm6 = vweird.f32 %v1145_v38  ;;  %v768_v20 = vld [vmem:[#allocation10 + $0xd8] sm:$0xff] }
 0x181   : > { %v1147_v41 = vpop.eup %1146  ;;  %633 = vmatmul.f32.vlgmr.msra.gmra.mxu1 %v593_v39  ;;  %vm565_vm10 = vmor %vm563_vm7, %vm564_vm6 }
 0x182   : > { %v559_v43 = vmul.f32 %v1145_v38, %v558_v23  ;;  %v568_v44 = vmul.f32 %v1147_v41, %v536_v27  ;;  %v556_v45 = vsel %vm555_vm5, %v1143_v19, %v552_v40  ;;  %vm574_vm9 = vweird.f32 %v1147_v41  ;;  %v769_v19 = vld [vmem:[#allocation10 + $0xe0] sm:$0xff]  ;;  %v763_v27 = vld [vmem:[#allocation10 + $0xb0] sm:$0xff] }
 0x183   : > { %v578_v46 = vmul.f32 %v556_v45, %v530_v42  ;;  %vm575_vm11 = vmor %vm573_vm8, %vm574_vm9  ;;  %781 = vmatpush.msra.mxu2 %v769_v19 }
 0x184   : > { %v560_v47 = vmul.f32 0.5, %v559_v43  ;;  %v569_v48 = vmul.f32 %v1147_v41, %v568_v44 }
 0x185   : > { %v586_v49 = vmul.f32 %v1133_v28, %v578_v46  ;;  %782 = vmatpush.msra.mxu2 %v768_v20 }
 0x186   : > { %v561_v50 = vsub.f32 1.5, %v560_v47  ;;  %v570_v51 = vmul.f32 0.5, %v569_v48 }
 0x187   : > { %v594_v52 = vadd.f32 %v1134_v33, %v586_v49  ;;  %783 = vmatpush.msra.mxu2 %v767_v21 }
 0x188   : > { %v571_v53 = vsub.f32 1.5, %v570_v51  ;;  %v562_v54 = vmul.f32 %v1145_v38, %v561_v50 }
 0x189   : > { %636 = vmatmul.f32.gmra.mxu1 %v594_v52  ;;  %784 = vmatpush.msra.mxu2 %v766_v22  ;;  %v822_v22 = vld [vmem:[#allocation11 + $0x58] sm:$0xff] }
 0x18a   : > { %v566_v55 = vsel %vm565_vm10, %v1145_v38, %v562_v54  ;;  %v572_v56 = vmul.f32 %v1147_v41, %v571_v53 }
 0x18b   : > { %v579_v57 = vmul.f32 %v566_v55, %v531_v26  ;;  %785 = vmatpush.msra.mxu2 %v765_v24 }
 0x18c   : > { %v576_v58 = vsel %vm575_vm11, %v1147_v41, %v572_v56 }
 0x18d   : > { %v587_v60 = vmul.f32 %v1133_v28, %v579_v57  ;;  %v580_v62 = vmul.f32 %v576_v58, %v532_v59  ;;  %786 = vmatpush.msra.mxu2 %v764_v25 }
 0x18f   : > { %v595_v61 = vadd.f32 %v1134_v33, %v587_v60  ;;  %v588_v63 = vmul.f32 %v1133_v28, %v580_v62  ;;  %787 = vmatpush.msra.mxu2 %v763_v27  ;;  %v762_v28 = vld [vmem:[#allocation10 + $0xa8] sm:$0xff] }
 0x191   : > { %639 = vmatmul.f32.gmra.mxu1 %v595_v61  ;;  %v596_v0 = vadd.f32 %v1134_v33, %v588_v63  ;;  %788 = vmatpush.msra.mxu2 %v762_v28  ;;  %v758_v33 = vld [vmem:[#allocation10 + $0x88] sm:$0xff]  ;;  %v821_v28 = vld [vmem:[#allocation11 + $0x50] sm:$0xff] }
 0x193   : > { %789 = vmatpush.msra.mxu2 %v761_v29 }
 0x195   : > { %790 = vmatpush.msra.mxu2 %v760_v31 }
 0x197   : > { %791 = vmatpush.msra.mxu2 %v759_v32 }
 0x199   : > { %642 = vmatmul.f32.gmra.mxu1 %v596_v0  ;;  %792 = vmatpush.msra.mxu2 %v758_v33  ;;  %v1705_v0 = vld [vmem:[%s1772_s3 + $0x1] ss:$0 sm:$0xff]  ;;  %v820_v33 = vld [vmem:[#allocation11 + $0x48] sm:$0xff] }
 0x19b   : > { %793 = vmatpush.msra.mxu2 %v757_v35 }
 0x1fe   : > { %v634_v1 = vpop.f32.mrf.mxu1 }
 0x1ff   : > { %v635_v2 = vadd.f32 %v1135_v30, %v634_v1 }
 0x201   : > { %v1674_v3 = vmax.f32 %v635_v2, 0.0  ;;  %v826_v2 = vld [vmem:[#allocation11 + $0x78] sm:$0xff] }
 0x202   : > { %831 = vmatpush.msra.mxu3 %v826_v2 }
 0x203   : > { %650 = vadd.xlane.f32.xlu2 %v1674_v3  ;;  %v662_v34 = vmul.f32 %v1674_v3, %v1674_v3 }
 0x205   : > { %666 = vadd.xlane.f32.xlu0 %v662_v34  ;;  %v825_v34 = vld [vmem:[#allocation11 + $0x70] sm:$0xff] }
 0x206   : > { %v637_v4 = vpop.f32.mrf.mxu1  ;;  %832 = vmatpush.msra.mxu3 %v825_v34 }
 0x207   : > { %v638_v5 = vadd.f32 %v1135_v30, %v637_v4 }
 0x209   : > { %v1679_v6 = vmax.f32 %v638_v5, 0.0 }
 0x20b   : > { %652 = vadd.xlane.f32.xlu1 %v1679_v6  ;;  %v663_v7 = vmul.f32 %v1679_v6, %v1679_v6 }
 0x20d   : > { %668 = vadd.xlane.f32.xlu2 %v663_v7 }
 0x20e   : > { %v640_v8 = vpop.f32.mrf.mxu1 }
 0x20f   : > { %v641_v9 = vadd.f32 %v1135_v30, %v640_v8 }
 0x211   : > { %v1684_v10 = vmax.f32 %v641_v9, 0.0 }
 0x213   : > { %654 = vadd.xlane.f32.xlu0 %v1684_v10  ;;  %v664_v11 = vmul.f32 %v1684_v10, %v1684_v10 }
 0x215   : > { %670 = vadd.xlane.f32.xlu1 %v664_v11 }
 0x216   : > { %v643_v12 = vpop.f32.mrf.mxu1 }
 0x217   : > { %v644_v13 = vadd.f32 %v1135_v30, %v643_v12  ;;  %v1712_v12 = vld [vmem:[#allocation8 + $0x1] ss:$0 sm:$0xff] }
 0x219   : > { %v1689_v14 = vmax.f32 %v644_v13, 0.0  ;;  %v824_v13 = vld [vmem:[#allocation11 + $0x68] sm:$0xff] }
 0x21a   : > { %833 = vmatpush.msra.mxu3 %v824_v13 }
 0x21b   : > { %656 = vadd.xlane.f32.xlu2 %v1689_v14  ;;  %v665_v15 = vmul.f32 %v1689_v14, %v1689_v14 }
 0x21c   : > { %834 = vmatpush.msra.mxu3 %v823_v17 }
 0x21d   : > { %672 = vadd.xlane.f32.xlu0 %v665_v15 }
 0x21e   : > { %835 = vmatpush.msra.mxu3 %v822_v22 }
 0x220   : > { %836 = vmatpush.msra.mxu3 %v821_v28 }
 0x222   : > { %837 = vmatpush.msra.mxu3 %v820_v33 }
 0x276   : > { %v651_v36 = vpop.xlane.xlu2 %650 }
 0x277   : > { %v658_v37 = vmul.f32 0.03125, %v651_v36 }
 0x278   : > { %v667_v38 = vpop.xlane.xlu0 %666 }
 0x279   : > { %v678_v39 = vmul.f32 %v658_v37, %v658_v37  ;;  %v674_v23 = vmul.f32 0.03125, %v667_v38  ;;  %v686_v30 = vsub.f32 %v1674_v3, %v658_v37  ;;  %v819_v37 = vld [vmem:[#allocation11 + $0x40] sm:$0xff] }
 0x27a   : > { %838 = vmatpush.msra.mxu3 %v819_v37 }
 0x27b   : > { %v682_v40 = vsub.f32 %v674_v23, %v678_v39  ;;  %v818_v23 = vld [vmem:[#allocation11 + $0x38] sm:$0xff] }
 0x27c   : > { %839 = vmatpush.msra.mxu3 %v818_v23 }
 0x27d   : > { %v690_v41 = vadd.f32 1e-05, %v682_v40 }
 0x27e   : > { %v653_v42 = vpop.xlane.xlu1 %652 }
 0x27f   : > { %1148 = vrsqrt.f32 %v690_v41  ;;  %v1694_v43 = vmul.f32 0.03125, %v653_v42  ;;  %vm700_vm13 = vweird.f32 %v690_v41 }
 0x280   : > { %v669_v44 = vpop.xlane.xlu2 %668 }
 0x281   : > { %v679_v45 = vmul.f32 %v1694_v43, %v1694_v43  ;;  %v675_v46 = vmul.f32 0.03125, %v669_v44  ;;  %v687_v27 = vsub.f32 %v1679_v6, %v1694_v43  ;;  %v817_v43 = vld [vmem:[#allocation11 + $0x30] sm:$0xff] }
 0x282   : > { %840 = vmatpush.msra.mxu3 %v817_v43 }
 0x283   : > { %v683_v47 = vsub.f32 %v675_v46, %v679_v45 }
 0x285   : > { %v1149_v48 = vpop.eup %1148  ;;  %v691_v49 = vadd.f32 1e-05, %v683_v47  ;;  %v816_v47 = vld [vmem:[#allocation11 + $0x28] sm:$0xff] }
 0x286   : > { %v695_v50 = vmul.f32 %v1149_v48, %v690_v41  ;;  %v655_v51 = vpop.xlane.xlu0 %654  ;;  %vm701_vm12 = vweird.f32 %v1149_v48  ;;  %841 = vmatpush.msra.mxu3 %v816_v47 }
 0x287   : > { %1150 = vrsqrt.f32 %v691_v49  ;;  %v1698_v52 = vmul.f32 0.03125, %v655_v51  ;;  %vm702_vm14 = vmor %vm700_vm13, %vm701_vm12  ;;  %vm710_vm0 = vweird.f32 %v691_v49 }
 0x288   : > { %v696_v53 = vmul.f32 %v1149_v48, %v695_v50  ;;  %v671_v54 = vpop.xlane.xlu1 %670  ;;  %v815_v50 = vld [vmem:[#allocation11 + $0x20] sm:$0xff] }
 0x289   : > { %v680_v26 = vmul.f32 %v1698_v52, %v1698_v52  ;;  %v676_v55 = vmul.f32 0.03125, %v671_v54  ;;  %v688_v42 = vsub.f32 %v1684_v10, %v1698_v52  ;;  %v814_v54 = vld [vmem:[#allocation11 + $0x18] sm:$0xff]  ;;  %842 = vmatpush.msra.mxu3 %v815_v50 }
 0x28a   : > { %v697_v56 = vmul.f32 0.5, %v696_v53 }
 0x28b   : > { %v684_v57 = vsub.f32 %v676_v55, %v680_v26  ;;  %843 = vmatpush.msra.mxu3 %v814_v54 }
 0x28c   : > { %v698_v58 = vsub.f32 1.5, %v697_v56 }
 0x28d   : > { %v1151_v59 = vpop.eup %1150  ;;  %v692_v60 = vadd.f32 1e-05, %v684_v57 }
 0x28e   : > { %v705_v61 = vmul.f32 %v1151_v59, %v691_v49  ;;  %v657_v62 = vpop.xlane.xlu2 %656  ;;  %v699_v63 = vmul.f32 %v1149_v48, %v698_v58  ;;  %vm711_vm15 = vweird.f32 %v1151_v59  ;;  %v813_v58 = vld [vmem:[#allocation11 + $0x10] sm:$0xff] }
 0x28f   : > { %1152 = vrsqrt.f32 %v692_v60  ;;  %v1708_v1 = vmul.f32 0.03125, %v657_v62  ;;  %vm712_vm1 = vmor %vm710_vm0, %vm711_vm15  ;;  %vm720_vm3 = vweird.f32 %v692_v60  ;;  %844 = vmatpush.msra.mxu3 %v813_v58 }
 0x290   : > { %v706_v4 = vmul.f32 %v1151_v59, %v705_v61  ;;  %v673_v5 = vpop.xlane.xlu0 %672  ;;  %v703_v7 = vsel %vm702_vm14, %v1149_v48, %v699_v63 }
 0x291   : > { %v681_v8 = vmul.f32 %v1708_v1, %v1708_v1  ;;  %v677_v9 = vmul.f32 0.03125, %v673_v5  ;;  %v734_v11 = vmul.f32 %v703_v7, %v686_v30  ;;  %v689_v52 = vsub.f32 %v1689_v14, %v1708_v1  ;;  %v1138_v14 = vld [vmem:[%s1775_s6 + $0x1] ss:$0 sm:$0xff] }
 0x292   : > { %v707_v15 = vmul.f32 0.5, %v706_v4 }
 0x293   : > { %v685_v3 = vsub.f32 %v677_v9, %v681_v8  ;;  %v743_v16 = vmul.f32 %v1705_v0, %v734_v11  ;;  %v1139_v9 = vld [vmem:[%s1777_s8] ss:$0 sm:$0xff] }
 0x294   : > { %v708_v18 = vsub.f32 1.5, %v707_v15 }
 0x295   : > { %v1153_v19 = vpop.eup %1152  ;;  %v693_v20 = vadd.f32 1e-05, %v685_v3  ;;  %v752_v21 = vadd.f32 %v1712_v12, %v743_v16 }
 0x296   : > { %v715_v24 = vmul.f32 %v1153_v19, %v692_v60  ;;  %v709_v25 = vmul.f32 %v1151_v59, %v708_v18  ;;  %vm721_vm2 = vweird.f32 %v1153_v19  ;;  %v811_v60 = vld [vmem:[#allocation11] sm:$0xff] }
 0x297   : > { %1154 = vrsqrt.f32 %v693_v20  ;;  %794 = vmatmul.f32.vlgmr.msra.gmra.mxu2 %v752_v21  ;;  %vm722_vm4 = vmor %vm720_vm3, %vm721_vm2  ;;  %vm730_vm6 = vweird.f32 %v693_v20 }
 0x298   : > { %v716_v29 = vmul.f32 %v1153_v19, %v715_v24  ;;  %v713_v31 = vsel %vm712_vm1, %v1151_v59, %v709_v25  ;;  %v812_v59 = vld [vmem:[#allocation11 + $0x8] sm:$0xff] }
 0x299   : > { %v735_v32 = vmul.f32 %v713_v31, %v687_v27  ;;  %845 = vmatpush.msra.mxu3 %v812_v59 }
 0x29a   : > { %v717_v35 = vmul.f32 0.5, %v716_v29 }
 0x29b   : > { %v744_v36 = vmul.f32 %v1705_v0, %v735_v32  ;;  %846 = vmatpush.msra.mxu3 %v811_v60 }
 0x29c   : > { %v718_v38 = vsub.f32 1.5, %v717_v35 }
 0x29d   : > { %v1155_v39 = vpop.eup %1154  ;;  %v753_v6 = vadd.f32 %v1712_v12, %v744_v36 }
 0x29e   : > { %v725_v40 = vmul.f32 %v1155_v39, %v693_v20  ;;  %v719_v41 = vmul.f32 %v1153_v19, %v718_v38  ;;  %vm731_vm5 = vweird.f32 %v1155_v39 }
 0x29f   : > { %797 = vmatmul.f32.gmra.mxu2 %v753_v6  ;;  %vm732_vm7 = vmor %vm730_vm6, %vm731_vm5 }
 0x2a0   : > { %v726_v44 = vmul.f32 %v1155_v39, %v725_v40  ;;  %v723_v45 = vsel %vm722_vm4, %v1153_v19, %v719_v41 }
 0x2a1   : > { %v736_v46 = vmul.f32 %v723_v45, %v688_v42 }
 0x2a2   : > { %v727_v48 = vmul.f32 0.5, %v726_v44 }
 0x2a3   : > { %v745_v49 = vmul.f32 %v1705_v0, %v736_v46 }
 0x2a4   : > { %v728_v51 = vsub.f32 1.5, %v727_v48 }
 0x2a5   : > { %v754_v53 = vadd.f32 %v1712_v12, %v745_v49 }
 0x2a6   : > { %v729_v10 = vmul.f32 %v1155_v39, %v728_v51 }
 0x2a7   : > { %800 = vmatmul.f32.gmra.mxu2 %v754_v53 }
 0x2a8   : > { %v733_v26 = vsel %vm732_vm7, %v1155_v39, %v729_v10 }
 0x2a9   : > { %v737_v55 = vmul.f32 %v733_v26, %v689_v52 }
 0x2ab   : > { %v746_v56 = vmul.f32 %v1705_v0, %v737_v55 }
 0x2ad   : > { %v755_v57 = vadd.f32 %v1712_v12, %v746_v56 }
 0x2af   : > { %803 = vmatmul.f32.gmra.mxu2 %v755_v57 }
 0x31a   : > { %v795_v61 = vpop.f32.mrf.mxu2 }
 0x31b   : > { %v796_v62 = vadd.f32 %v1138_v14, %v795_v61 }
 0x31d   : > { %v807_v63 = vmax.f32 %v796_v62, 0.0 }
 0x31f   : > { %847 = vmatmul.f32.vlgmr.msra.gmra.mxu3 %v807_v63 }
 0x322   : > { %v798_v30 = vpop.f32.mrf.mxu2 }
 0x323   : > { %v799_v0 = vadd.f32 %v1138_v14, %v798_v30 }
 0x325   : > { %v808_v1 = vmax.f32 %v799_v0, 0.0 }
 0x327   : > { %850 = vmatmul.f32.gmra.mxu3 %v808_v1 }
 0x32a   : > { %v801_v2 = vpop.f32.mrf.mxu2 }
 0x32b   : > { %v802_v34 = vadd.f32 %v1138_v14, %v801_v2 }
 0x32d   : > { %v809_v4 = vmax.f32 %v802_v34, 0.0 }
 0x32f   : > { %853 = vmatmul.f32.gmra.mxu3 %v809_v4 }
 0x332   : > { %v804_v5 = vpop.f32.mrf.mxu2 }
 0x333   : > { %v805_v7 = vadd.f32 %v1138_v14, %v804_v5 }
 0x335   : > { %v810_v8 = vmax.f32 %v805_v7, 0.0 }
 0x337   : > { %856 = vmatmul.f32.gmra.mxu3 %v810_v8 }
 0x3a2   : > { %v848_v11 = vpop.f32.mrf.mxu3 }
 0x3a3   : > { %v849_v12 = vadd.f32 %v1139_v9, %v848_v11 }
 0x3a5   : > { %860 = vst [vmem:[%s433_s21] sm:$0xff] %v849_v12 }
 0x3aa   : > { %v851_v13 = vpop.f32.mrf.mxu3 }
 0x3ab   : > { %v852_v15 = vadd.f32 %v1139_v9, %v851_v13 }
 0x3ad   : > { %861 = vst [vmem:[%s433_s21 + $0x8] sm:$0xff] %v852_v15 }
 0x3b2   : > { %v854_v3 = vpop.f32.mrf.mxu3 }
 0x3b3   : > { %v855_v16 = vadd.f32 %v1139_v9, %v854_v3 }
 0x3b5   : > { %862 = vst [vmem:[%s433_s21 + $0x10] sm:$0xff] %v855_v16 }
 0x3ba   : > { %v857_v17 = vpop.f32.mrf.mxu3 }
 0x3bb   : > { %v858_v18 = vadd.f32 %v1139_v9, %v857_v17 }
 0x3bd   : > { %863 = vst [vmem:[%s433_s21 + $0x18] sm:$0xff] %v858_v18 }
 0x3be   : > { %1363 = shalt.err (!%p1360_p9)
}
 0x3bf   : > { %s1425_s28 = smov 128   ;;  %s1426_s21 = smov 8  }
 0x3c0   : > { %1051 = dma.vmem_to_hbm [thread:$0]  (%p1572_p13), %s878_s27, 512, %s880_s23, %s865_s2, %s1425_s28, %s1425_s28, %s1426_s21  }
 0x3c1 PF: > { %s894_s4 = sand.u32 1, %s1402_s30   ;;  %p1795_p10 = scmp.ge.s32.totalorder %s1414_s12, 2 }
 0x3c2   : > { %s895_s29 = scalar_lea.sflag [#allocation4], %s894_s4 }
 0x3c3   : > { %p1074_p11 = pnand %p1795_p10, %p1577_p4 }
 0x3c5   : > { %p1075_p0 = pneg %p1074_p11 }
 0x3c7   : > { %1397 = dma.done.wait (%p1075_p0), %s895_s29, 512  }
 0x3c8   : > { %1399 = vsyncadd (%p1075_p0), %s895_s29, 4294966784  ;;  %p25_p2 = scmp.ge.s32.totalorder %s1552_s18, 4   ;;  %s1796_s30 = smov %s1406_s10 }
 0x3c9   : > { %s1797_s10 = smov %s1410_s11  ;;  %s1798_s11 = smov %s1564_s24 }
 0x3ca   : > { %s1799_s12 = smov %s1552_s18  ;;  %27 = sbr.rel (!%p25_p2) target bundleno = 12 (0xc), region = 125 }
 0x3cf   :  { %901 = vsyncpa [#allocation3], 1 }
 0x3d0   :  { %903 = vsyncpa [#allocation3 + $0x1], 1 }
 0x3d1   :  { %904 = vsyncpa [#allocation6], 1 }
 0x3d2   :  { %905 = vsyncpa [#allocation9], 1 }
 0x3d3   :  { %906 = vsyncpa [#allocation12], 1 }
 0x3d4   :  { %907 = vsyncpa [#allocation4], 1 }
 0x3d5   :  { %909 = vsyncpa [#allocation4 + $0x1], 1 }

</bundles_post_ra>
